<compile_context>
chip_gen: v6e
topology: v6e:2x2x1
jax: 0.10.0
libtpu: 0.0.40
codegen_flags: <defaults>
</compile_context>

<pallas_src>
import functools

import jax
import jax.numpy as jnp
from jax import lax
from jax.experimental import pallas as pl
from jax.experimental.pallas import tpu as pltpu


def _round_up(n: int, m: int) -> int:
    return ((n + m - 1) // m) * m


def _gaussian_actor_kernel(action_dim,
                           x_ref,
                           w1_ref, b1_ref,
                           w2_ref, b2_ref,
                           wh_ref, bh_ref,
                           out_ref):
    x = x_ref[...]
    # body: Linear -> Tanh -> Linear -> Tanh  (MXU matmuls, f32 accumulation;
    # tanh/exp go to the EUP slot so they are essentially free next to the matmuls).
    h1 = jnp.tanh(
        jnp.dot(x, w1_ref[...], preferred_element_type=jnp.float32) + b1_ref[...]
    )
    h2 = jnp.tanh(
        jnp.dot(h1, w2_ref[...], preferred_element_type=jnp.float32) + b2_ref[...]
    )
    # Fused mu|std head: one matmul, one lane-dense (TB, 128) store.
    head = jnp.dot(h2, wh_ref[...], preferred_element_type=jnp.float32) + bh_ref[...]
    # lanes [0, A): mu (identity); lanes [A, ...): std logits -> exp.
    # Zero-padded lanes become exp(0)=1 and are sliced off in the wrapper.
    lane = lax.broadcasted_iota(jnp.int32, head.shape, dimension=1)
    out_ref[...] = jnp.where(lane < action_dim, head, jnp.exp(head))


def gaussian_actor_forward(x, params, *, tb=None):
    """GaussianActorMlpNet forward pass as a single Pallas TPU kernel.

    Args:
      x: (B, state_dim) float32.
      params: dict with w1, b1, w2, b2, w_mu, b_mu, w_std, b_std
              (weights as (in, out); biases as (1, out)).
      tb: optional batch tile (multiple of 8). Defaults to min(round_up(B, 8), 256).
    Returns:
      (pi_mu, pi_sigma): each (B, action_dim) float32.
    """
    B, state_dim = x.shape
    hidden = params["w1"].shape[1]
    action_dim = params["w_mu"].shape[1]

    # ---- fuse the two heads into one lane-dense weight/bias (pad to 128 lanes) ----
    head_dim = 2 * action_dim
    head_pad = _round_up(max(head_dim, 128), 128)
    w_head = jnp.zeros((hidden, head_pad), jnp.float32)
    w_head = w_head.at[:, :action_dim].set(params["w_mu"])
    w_head = w_head.at[:, action_dim:head_dim].set(params["w_std"])
    b_head = jnp.zeros((1, head_pad), jnp.float32)
    b_head = b_head.at[:, :action_dim].set(params["b_mu"].reshape(1, -1))
    b_head = b_head.at[:, action_dim:head_dim].set(params["b_std"].reshape(1, -1))

    # ---- pad batch to a sublane/tile multiple and pick a batch tile ----
    if tb is None:
        tb = min(_round_up(B, 8), 256)
    assert tb % 8 == 0, "batch tile must be a sublane multiple"
    b_pad = _round_up(B, tb)
    if b_pad != B:
        x = jnp.pad(x, ((0, b_pad - B), (0, 0)))

    grid = (b_pad // tb,)

    def tile_batch(i):
        return (i, 0)

    def replicate(i):
        return (0, 0)

    in_specs = [
        pl.BlockSpec((tb, state_dim), tile_batch),     # x: tiled over batch
        pl.BlockSpec(params["w1"].shape, replicate),   # weights/biases: VMEM-resident,
        pl.BlockSpec(params["b1"].shape, replicate),   # replicated across grid steps
        pl.BlockSpec(params["w2"].shape, replicate),
        pl.BlockSpec(params["b2"].shape, replicate),
        pl.BlockSpec(w_head.shape, replicate),
        pl.BlockSpec(b_head.shape, replicate),
    ]
    out_specs = pl.BlockSpec((tb, head_pad), tile_batch)   # single lane-dense output

    out = pl.pallas_call(
        functools.partial(_gaussian_actor_kernel, action_dim),
        out_shape=jax.ShapeDtypeStruct((b_pad, head_pad), jnp.float32),
        grid=grid,
        in_specs=in_specs,
        out_specs=out_specs,
        compiler_params=pltpu.CompilerParams(
            dimension_semantics=("parallel",),   # batch tiles are independent (megacore)
        ),
    )(x, params["w1"], params["b1"], params["w2"], params["b2"], w_head, b_head)

    pi_mu = out[:B, :action_dim]
    pi_sigma = out[:B, action_dim:head_dim]
    return pi_mu, pi_sigma


def init_params(key, state_dim, action_dim, hidden_size):
    """Deterministic PyTorch-like (uniform +-1/sqrt(fan_in)) initialization."""
    ks = jax.random.split(key, 8)

    def linear(kw, kb, fan_in, fan_out):
        bound = 1.0 / jnp.sqrt(fan_in)
        w = jax.random.uniform(kw, (fan_in, fan_out), jnp.float32, -bound, bound)
        b = jax.random.uniform(kb, (1, fan_out), jnp.float32, -bound, bound)
        return w, b

    w1, b1 = linear(ks[0], ks[1], state_dim, hidden_size)
    w2, b2 = linear(ks[2], ks[3], hidden_size, hidden_size)
    w_mu, b_mu = linear(ks[4], ks[5], hidden_size, action_dim)
    w_std, b_std = linear(ks[6], ks[7], hidden_size, action_dim)
    return {
        "w1": w1, "b1": b1,
        "w2": w2, "b2": b2,
        "w_mu": w_mu, "b_mu": b_mu,
        "w_std": w_std, "b_std": b_std,
    }


def reference_forward(x, p):
    h1 = jnp.tanh(x @ p["w1"] + p["b1"])
    h2 = jnp.tanh(h1 @ p["w2"] + p["b2"])
    mu = h2 @ p["w_mu"] + p["b_mu"]
    sigma = jnp.exp(h2 @ p["w_std"] + p["b_std"])
    return mu, sigma


if __name__ == "__main__":
    key = jax.random.PRNGKey(0)
    k_param, k_x = jax.random.split(key)

    batch = 2
    state_dim = 8
    action_dim = 4
    hidden_size = 32

    params = init_params(k_param, state_dim, action_dim, hidden_size)
    x = jax.random.normal(k_x, (batch, state_dim), jnp.float32)

    fwd = jax.jit(gaussian_actor_forward)
    pi_mu, pi_sigma = fwd(x, params)
    jax.block_until_ready((pi_mu, pi_sigma))

    ref_mu, ref_sigma = reference_forward(x, params)
    assert pi_mu.shape == (batch, action_dim)
    assert pi_sigma.shape == (batch, action_dim)
    assert jnp.allclose(pi_mu, ref_mu, atol=1e-5, rtol=1e-5)
    assert jnp.allclose(pi_sigma, ref_sigma, atol=1e-5, rtol=1e-5)

    print("KERNEL_OK")
</pallas_src>

<mosaic_0001>
module attributes {stable_mosaic.version = 11 : i64} {
  func.func @_gaussian_actor_kernel(%arg0: i32, %arg1: memref<8x8xf32, #tpu.memory_space<vmem>>, %arg2: memref<8x32xf32, #tpu.memory_space<vmem>>, %arg3: memref<1x32xf32, #tpu.memory_space<vmem>>, %arg4: memref<32x32xf32, #tpu.memory_space<vmem>>, %arg5: memref<1x32xf32, #tpu.memory_space<vmem>>, %arg6: memref<32x128xf32, #tpu.memory_space<vmem>>, %arg7: memref<1x128xf32, #tpu.memory_space<vmem>>, %arg8: memref<8x128xf32, #tpu.memory_space<vmem>>) attributes {dimension_semantics = [#tpu.dimension_semantics<parallel>], iteration_bounds = array<i64: 1>, scalar_prefetch = 0 : i64, scratch_operands = 0 : i64, tpu.core_type = #tpu.core_type<tc>, window_params = [{transform_indices = @transform_0, window_bounds = array<i64: 8, 8>}, {pipeline_mode = #tpu.pipeline_mode<synchronous>, transform_indices = @transform_1, window_bounds = array<i64: 8, 32>}, {pipeline_mode = #tpu.pipeline_mode<synchronous>, transform_indices = @transform_2, window_bounds = array<i64: 1, 32>}, {pipeline_mode = #tpu.pipeline_mode<synchronous>, transform_indices = @transform_3, window_bounds = array<i64: 32, 32>}, {pipeline_mode = #tpu.pipeline_mode<synchronous>, transform_indices = @transform_4, window_bounds = array<i64: 1, 32>}, {pipeline_mode = #tpu.pipeline_mode<synchronous>, transform_indices = @transform_5, window_bounds = array<i64: 32, 128>}, {pipeline_mode = #tpu.pipeline_mode<synchronous>, transform_indices = @transform_6, window_bounds = array<i64: 1, 128>}, {transform_indices = @transform_7, window_bounds = array<i64: 8, 128>}]} {
    %c0 = arith.constant 0 : index
    %c0_0 = arith.constant 0 : index
    %0 = vector.load %arg1[%c0, %c0_0] : memref<8x8xf32, #tpu.memory_space<vmem>>, vector<8x8xf32>
    %c0_1 = arith.constant 0 : index
    %c0_2 = arith.constant 0 : index
    %1 = vector.load %arg2[%c0_1, %c0_2] : memref<8x32xf32, #tpu.memory_space<vmem>>, vector<8x32xf32>
    %cst = arith.constant dense<0.000000e+00> : vector<8x32xf32>
    %2 = tpu.matmul %0, %1, %cst {dimension_numbers = #tpu.dot_dimension_numbers<[1], [0], [0], [1], [0, 0, 1, 1], [], []>} : vector<8x8xf32>, vector<8x32xf32>, vector<8x32xf32> -> vector<8x32xf32>
    %c0_3 = arith.constant 0 : index
    %c0_4 = arith.constant 0 : index
    %3 = vector.load %arg3[%c0_3, %c0_4] : memref<1x32xf32, #tpu.memory_space<vmem>>, vector<1x32xf32>
    %4 = vector.broadcast %3 : vector<1x32xf32> to vector<8x32xf32>
    %5 = arith.addf %2, %4 : vector<8x32xf32>
    %6 = math.tanh %5 : vector<8x32xf32>
    %c0_5 = arith.constant 0 : index
    %c0_6 = arith.constant 0 : index
    %7 = vector.load %arg4[%c0_5, %c0_6] : memref<32x32xf32, #tpu.memory_space<vmem>>, vector<32x32xf32>
    %cst_7 = arith.constant dense<0.000000e+00> : vector<8x32xf32>
    %8 = tpu.matmul %6, %7, %cst_7 {dimension_numbers = #tpu.dot_dimension_numbers<[1], [0], [0], [1], [0, 0, 1, 1], [], []>} : vector<8x32xf32>, vector<32x32xf32>, vector<8x32xf32> -> vector<8x32xf32>
    %c0_8 = arith.constant 0 : index
    %c0_9 = arith.constant 0 : index
    %9 = vector.load %arg5[%c0_8, %c0_9] : memref<1x32xf32, #tpu.memory_space<vmem>>, vector<1x32xf32>
    %10 = vector.broadcast %9 : vector<1x32xf32> to vector<8x32xf32>
    %11 = arith.addf %8, %10 : vector<8x32xf32>
    %12 = math.tanh %11 : vector<8x32xf32>
    %c0_10 = arith.constant 0 : index
    %c0_11 = arith.constant 0 : index
    %13 = vector.load %arg6[%c0_10, %c0_11] : memref<32x128xf32, #tpu.memory_space<vmem>>, vector<32x128xf32>
    %cst_12 = arith.constant dense<0.000000e+00> : vector<8x128xf32>
    %14 = tpu.matmul %12, %13, %cst_12 {dimension_numbers = #tpu.dot_dimension_numbers<[1], [0], [0], [1], [0, 0, 1, 1], [], []>} : vector<8x32xf32>, vector<32x128xf32>, vector<8x128xf32> -> vector<8x128xf32>
    %c0_13 = arith.constant 0 : index
    %c0_14 = arith.constant 0 : index
    %15 = vector.load %arg7[%c0_13, %c0_14] : memref<1x128xf32, #tpu.memory_space<vmem>>, vector<1x128xf32>
    %16 = vector.broadcast %15 : vector<1x128xf32> to vector<8x128xf32>
    %17 = arith.addf %14, %16 : vector<8x128xf32>
    %18 = tpu.iota {dimensions = array<i32: 1>} : vector<8x128xi32>
    %c4_i32 = arith.constant 4 : i32
    %19 = vector.broadcast %c4_i32 : i32 to vector<8x128xi32>
    %20 = arith.cmpi slt, %18, %19 : vector<8x128xi32>
    %21 = math.exp %17 : vector<8x128xf32>
    %22 = arith.select %20, %17, %21 : vector<8x128xi1>, vector<8x128xf32>
    %c0_15 = arith.constant 0 : index
    %c0_16 = arith.constant 0 : index
    %23 = vector.load %arg8[%c0_15, %c0_16] : memref<8x128xf32, #tpu.memory_space<vmem>>, vector<8x128xf32>
    tpu.vector_store %arg8[%c0_15, %c0_16], %22 {strides = array<i32>} : memref<8x128xf32, #tpu.memory_space<vmem>>, vector<8x128xf32>,
    return
  }
  func.func @transform_0(%arg0: i32) -> (i32, i32) {
    %c0_i32 = arith.constant 0 : i32
    %c0_i32_0 = arith.constant 0 : i32
    return %arg0, %c0_i32 : i32, i32
  }
  func.func @transform_1(%arg0: i32) -> (i32, i32) {
    %c0_i32 = arith.constant 0 : i32
    %c0_i32_0 = arith.constant 0 : i32
    %c0_i32_1 = arith.constant 0 : i32
    return %c0_i32, %c0_i32_0 : i32, i32
  }
  func.func @transform_2(%arg0: i32) -> (i32, i32) {
    %c0_i32 = arith.constant 0 : i32
    %c0_i32_0 = arith.constant 0 : i32
    %c0_i32_1 = arith.constant 0 : i32
    return %c0_i32, %c0_i32_0 : i32, i32
  }
  func.func @transform_3(%arg0: i32) -> (i32, i32) {
    %c0_i32 = arith.constant 0 : i32
    %c0_i32_0 = arith.constant 0 : i32
    %c0_i32_1 = arith.constant 0 : i32
    return %c0_i32, %c0_i32_0 : i32, i32
  }
  func.func @transform_4(%arg0: i32) -> (i32, i32) {
    %c0_i32 = arith.constant 0 : i32
    %c0_i32_0 = arith.constant 0 : i32
    %c0_i32_1 = arith.constant 0 : i32
    return %c0_i32, %c0_i32_0 : i32, i32
  }
  func.func @transform_5(%arg0: i32) -> (i32, i32) {
    %c0_i32 = arith.constant 0 : i32
    %c0_i32_0 = arith.constant 0 : i32
    %c0_i32_1 = arith.constant 0 : i32
    return %c0_i32, %c0_i32_0 : i32, i32
  }
  func.func @transform_6(%arg0: i32) -> (i32, i32) {
    %c0_i32 = arith.constant 0 : i32
    %c0_i32_0 = arith.constant 0 : i32
    %c0_i32_1 = arith.constant 0 : i32
    return %c0_i32, %c0_i32_0 : i32, i32
  }
  func.func @transform_7(%arg0: i32) -> (i32, i32) {
    %c0_i32 = arith.constant 0 : i32
    %c0_i32_0 = arith.constant 0 : i32
    return %arg0, %c0_i32 : i32, i32
  }
}

</mosaic_0001>

<bundles_post_ra>
// kernel: gaussian_actor_forward.1
= control target key start
LH: loop header
LB: loop body
LE: loop exit
PB: predicated region body
PF: predicated region fallthrough
CT: control target
= control target key end

     0   :  { %vm35_vm0 = vcmask 64512   ;;  %v344_v0 = vmov 0.0   ;;  %vm345_vm1 = vmmov 0   ;;  %vm121_vm2 = vcmask 261120   ;;  %s430_s1 = inlined_call_operand.vmem [shape: f32[8,32], index: 1, kind: input, shape index: {}]   ;;  %s431_s0 = inlined_call_operand.vmem [shape: f32[8,8], index: 0, kind: input, shape index: {}]   ;;  %s432_s3 = inlined_call_operand.vmem [shape: f32[32,32], index: 3, kind: input, shape index: {}]   ;;  %s433_s2 = inlined_call_operand.vmem [shape: f32[1,32], index: 2, kind: input, shape index: {}]   ;;  %s434_s5 = inlined_call_operand.vmem [shape: f32[32,128], index: 5, kind: input, shape index: {}]   ;;  %s435_s4 = inlined_call_operand.vmem [shape: f32[1,32], index: 4, kind: input, shape index: {}]   ;;  %s436_s6 = inlined_call_operand.vmem [shape: f32[1,128], index: 6, kind: input, shape index: {}]   ;;  %s437_s7 = inlined_call_operand.vmem [shape: f32[8,128], index: 7, kind: output, shape index: {}]  }
   0x1   :  { %309 = vmatprep.subr.mxu0 %v344_v0  ;;  %v27_v1 = vld [vmem:[%s430_s1] sm:$0xff]  ;;  %311 = vmatprep.mubr.msk.f32.mxu0 %vm345_vm1, %v344_v0  ;;  %v113_v3 = vld [vmem:[%s432_s3 + $0x18] sm:$0xff]  ;;  %v112_v4 = vld [vmem:[%s432_s3 + $0x10] sm:$0xff]  ;;  %v280_v26 = vlaneseq }
   0x2   :  { %v26_v2 = vld [vmem:[%s431_s0] sm:$0xff]  ;;  %310 = vmatpush3.msra.mxu0 %v27_v1  ;;  %314 = vmatprep.subr.mxu1 %v344_v0  ;;  %v111_v5 = vld [vmem:[%s432_s3 + $0x8] sm:$0xff]  ;;  %v199_v12 = vld [vmem:[%s434_s5 + $0x18] sm:$0xff] }
   0x3   :  { %312 = vmatmul.mubr.msk.f32.vlgmr.msra.gmra.mxu0 %vm35_vm0, %v26_v2  ;;  %322 = vmatprep.mubr.msk.f32.mxu1 %vm345_vm1, %v344_v0  ;;  %v110_v6 = vld [vmem:[%s432_s3] sm:$0xff]  ;;  %v198_v13 = vld [vmem:[%s434_s5 + $0x10] sm:$0xff]  ;;  %v197_v14 = vld [vmem:[%s434_s5 + $0x8] sm:$0xff]  ;;  %v281_v27 = vand.u32 127, %v280_v26 }
   0x4   :  { %325 = vmatprep.subr.mxu0 %v344_v0  ;;  %333 = vmatprep.mubr.msk.f32.mxu0 %vm345_vm1, %v344_v0  ;;  %v291_v7 = vld [vmem:[%s433_s2] ss:$0 sm:$0xff] }
   0x5   :  { %315 = vmatpush3.msra.mxu1 %v113_v3  ;;  %326 = vmatpush3.msra.mxu0 %v199_v12  ;;  %v196_v15 = vld [vmem:[%s434_s5] sm:$0xff]  ;;  %vm282_vm3 = vcmp.lt.s32.totalorder %v281_v27, 4 }
   0x6   :  { %316 = vmatprep.subr.mxu1 %v344_v0  ;;  %327 = vmatprep.subr.mxu0 %v344_v0  ;;  %v293_v16 = vld [vmem:[%s435_s4] ss:$0 sm:$0xff] }
   0x7   :  { %317 = vmatpush3.msra.mxu1 %v112_v4  ;;  %328 = vmatpush3.msra.mxu0 %v198_v13  ;;  %v295_v21 = vld [vmem:[%s436_s6] ss:$0 sm:$0xff] }
   0x8   :  { %318 = vmatprep.subr.mxu1 %v344_v0  ;;  %329 = vmatprep.subr.mxu0 %v344_v0 }
   0x9   :  { %319 = vmatpush3.msra.mxu1 %v111_v5  ;;  %330 = vmatpush3.msra.mxu0 %v197_v14 }
   0xa   :  { %320 = vmatprep.subr.mxu1 %v344_v0  ;;  %331 = vmatprep.subr.mxu0 %v344_v0 }
   0xb   :  { %321 = vmatpush3.msra.mxu1 %v110_v6  ;;  %332 = vmatpush3.msra.mxu0 %v196_v15 }
  0xc3   :  { %v105_v8 = vpop.f32.mrf.mxu0 }
  0xc4   :  { %v106_v9 = vadd.f32 %v291_v7, %v105_v8 }
  0xc5   :  { %v313_v10 = vpop.f32.mrf.mxu0 }
  0xc6   :  { %338 = vtanh.f32 %v106_v9 }
  0xd3   :  { %v339_v11 = vpop.eup %338 }
  0xd4   :  { %323 = vmatmul.mubr.msk.f32.vlgmr.msra.gmra.mxu1 %vm121_vm2, %v339_v11 }
 0x194   :  { %v191_v17 = vpop.f32.mrf.mxu1 }
 0x195   :  { %v192_v18 = vadd.f32 %v293_v16, %v191_v17 }
 0x196   :  { %v324_v19 = vpop.f32.mrf.mxu1 }
 0x197   :  { %340 = vtanh.f32 %v192_v18 }
 0x1a4   :  { %v341_v20 = vpop.eup %340 }
 0x1a5   :  { %334 = vmatmul.mubr.msk.f32.vlgmr.msra.gmra.mxu0 %vm121_vm2, %v341_v20 }
 0x265   :  { %v276_v22 = vpop.f32.mrf.mxu0 }
 0x266   :  { %v277_v23 = vadd.f32 %v295_v21, %v276_v22 }
 0x267   :  { %v335_v24 = vpop.f32.mrf.mxu0 }
 0x268   :  { %v283_v25 = vmul.f32 1.442695, %v277_v23 }
 0x26a   :  { %342 = vpow2.f32 %v283_v25 }
 0x277   :  { %v343_v28 = vpop.eup %342 }
 0x278   :  { %v285_v29 = vsel %vm282_vm3, %v277_v23, %v343_v28 }
 0x279   :  { %286 = vst [vmem:[%s437_s7] sm:$0xff] %v285_v29 }

</bundles_post_ra>
